<compile_context>
chip_gen: v7x
topology: tpu7x:2x2x1
jax: 0.10.0
libtpu: 0.0.40
codegen_flags: <defaults>
</compile_context>

<pallas_src>
import functools

import jax
import jax.numpy as jnp
from jax import lax
from jax.experimental import pallas as pl
from jax.experimental.pallas import tpu as pltpu

EPS = 1e-5  # PyTorch BatchNorm2d default


def _round_up(x, m):
    return (x + m - 1) // m * m


@functools.lru_cache(maxsize=None)
def _roll_matches_jnp() -> bool:
    """One-time probe of pltpu.roll's shift convention (vs. jnp.roll)."""
    def probe(x_ref, o_ref):
        o_ref[...] = pltpu.roll(x_ref[...], 1, axis=1)

    x = jnp.arange(128, dtype=jnp.float32).reshape(1, 128)
    y = pl.pallas_call(probe, out_shape=jax.ShapeDtypeStruct((1, 128), jnp.float32))(x)
    return bool(y[0, 0] == 127.0)  # jnp.roll(x, 1)[0] == x[-1]


def _block_kernel(x_ref, w1_ref, g1_ref, b1_ref, w2_ref, g2_ref, b2_ref, *rest,
                  N, H, W, use_bn, has_proj, roll_like_jnp):
    if has_proj:
        wsc_ref, gsc_ref, bsc_ref, o_ref = rest
    else:
        (o_ref,) = rest

    M = N * H * W
    inv_m = 1.0 / M

    # Lane-index -> (h, w) decomposition, shared by both convs (m = n*H*W + h*W + w).
    lane = lax.broadcasted_iota(jnp.int32, (1, M), 1)
    h_idx = (lane // W) % H
    w_idx = lane % W

    # Static (roll amount, validity mask) for the 9 taps of a 3x3 / pad=1 conv.
    taps_meta = []
    for dh in (-1, 0, 1):
        for dw in (-1, 0, 1):
            s = dh * W + dw                          # want tap[m] = a[m + s]
            amount = ((-s) if roll_like_jnp else s) % M
            conds = []
            if dh < 0:
                conds.append(h_idx >= -dh)
            if dh > 0:
                conds.append(h_idx < H - dh)
            if dw < 0:
                conds.append(w_idx >= -dw)
            if dw > 0:
                conds.append(w_idx < W - dw)
            mask = functools.reduce(lambda a, b: a & b, conds) if conds else None
            taps_meta.append((amount, mask))

    def conv3x3(a2d, w_stacked):
        """a2d: (C, M) f32 tap source; w_stacked: (Co, 9*C) bf16 -> (Co, M) f32."""
        taps = []
        for amount, mask in taps_meta:
            t = pltpu.roll(a2d, amount, axis=1) if amount else a2d
            if mask is not None:
                t = jnp.where(mask, t, 0.0)          # implicit zero padding
            taps.append(t)
        k = jnp.concatenate(taps, axis=0).astype(jnp.bfloat16)   # (9*C, M)
        return jnp.dot(w_stacked, k, preferred_element_type=jnp.float32)

    def bn(acc, g, b):
        """Training-mode BN, one-pass stats (lane reduce), folded scale/shift."""
        s1 = jnp.sum(acc, axis=1, keepdims=True)                  # (C, 1)
        s2 = jnp.sum(acc * acc, axis=1, keepdims=True)            # (C, 1)
        mean = s1 * inv_m
        var = jnp.maximum(s2 * inv_m - mean * mean, 0.0)          # biased var
        scale = g * lax.rsqrt(var + EPS)                          # EUP rsqrt
        shift = b - mean * scale
        return acc * scale + shift

    x2d = x_ref[...]                                              # (Cin_p, M) f32

    # conv1 + BN1 + ReLU (result stays in vregs/VMEM, never hits HBM)
    out1 = conv3x3(x2d, w1_ref[...])                              # (Cmid_p, M) f32
    if use_bn:
        out1 = bn(out1, g1_ref[...], b1_ref[...])
    out1 = jnp.maximum(out1, 0.0)

    # conv2 + BN2
    out2 = conv3x3(out1, w2_ref[...])                             # (Cout, M) f32
    if use_bn:
        out2 = bn(out2, g2_ref[...], b2_ref[...])

    # shortcut: identity or 1x1-conv + BN (BN unconditional inside the Sequential)
    if has_proj:
        sc = jnp.dot(wsc_ref[...], x2d.astype(jnp.bfloat16),
                     preferred_element_type=jnp.float32)
        sc = bn(sc, gsc_ref[...], bsc_ref[...])
    else:
        sc = x2d[:o_ref.shape[0], :]

    o_ref[...] = jnp.maximum(out2 + sc, 0.0).astype(o_ref.dtype)  # lane-dense store


def _full_spec(shape):
    nd = len(shape)
    return pl.BlockSpec(shape, lambda i, _n=nd: (0,) * _n)


def basic_block_forward(x_nchw, params, *, stride=1, use_bn=True):
    # TODO(synk): stride > 1 (constructor option) not implemented; this script
    # instantiates the block with stride=1 like the PyTorch default.
    assert stride == 1, "only stride=1 implemented"

    x = x_nchw.astype(jnp.float32)
    N, Cin, H, W = x.shape
    M = N * H * W
    Cmid = params["w1"].shape[-1]
    Cout = params["w2"].shape[-1]
    has_proj = (stride != 1) or (Cin != Cout)

    # Channel-on-sublane / flattened-spatial-on-lane layout.  Pad the channel
    # dims of the tap sources to a multiple of 8 so in-kernel K-stacking stays
    # sublane-tile aligned (padded rows are zero and contribute nothing).
    cin_p = _round_up(Cin, 8)
    cmid_p = _round_up(Cmid, 8)

    x2d = x.transpose(1, 0, 2, 3).reshape(Cin, M)
    x2d = jnp.pad(x2d, ((0, cin_p - Cin), (0, 0)))

    def stack_w(w, ci_p, co_p):
        # HWIO (3,3,Ci,Co) -> (Co_p, 9*Ci_p), K ordered as (kh, kw, ci).
        kh, kw, ci, co = w.shape
        wp = jnp.pad(w, ((0, 0), (0, 0), (0, ci_p - ci), (0, co_p - co)))
        return wp.transpose(3, 0, 1, 2).reshape(co_p, kh * kw * ci_p).astype(jnp.bfloat16)

    def pad_bn(g, b, c, c_p):
        g = jnp.pad(g.reshape(c, 1), ((0, c_p - c), (0, 0)), constant_values=1.0)
        b = jnp.pad(b.reshape(c, 1), ((0, c_p - c), (0, 0)))
        return g.astype(jnp.float32), b.astype(jnp.float32)

    w1s = stack_w(params["w1"], cin_p, cmid_p)            # (Cmid_p, 9*Cin_p) bf16
    g1, b1 = pad_bn(params["g1"], params["b1"], Cmid, cmid_p)
    w2s = stack_w(params["w2"], cmid_p, Cout)             # (Cout, 9*Cmid_p) bf16
    g2 = params["g2"].reshape(Cout, 1).astype(jnp.float32)
    b2 = params["b2"].reshape(Cout, 1).astype(jnp.float32)

    args = [x2d, w1s, g1, b1, w2s, g2, b2]
    if has_proj:
        wsc_t = jnp.pad(params["wsc"].T, ((0, 0), (0, cin_p - Cin))).astype(jnp.bfloat16)
        gsc = params["gsc"].reshape(Cout, 1).astype(jnp.float32)
        bsc = params["bsc"].reshape(Cout, 1).astype(jnp.float32)
        args += [wsc_t, gsc, bsc]

    kernel = functools.partial(
        _block_kernel, N=N, H=H, W=W, use_bn=use_bn, has_proj=has_proj,
        roll_like_jnp=_roll_matches_jnp())

    # TODO(synk): at ResNet-scale shapes, tile the N*H*W lane axis with a
    # 'parallel' grid axis and two-phase BN stats (re-derive tiles for v7x's
    # 64 MiB VMEM); at this toy size everything fits in one fused grid step.
    out2d = pl.pallas_call(
        kernel,
        grid=(1,),
        in_specs=[_full_spec(a.shape) for a in args],
        out_specs=_full_spec((Cout, M)),
        out_shape=jax.ShapeDtypeStruct((Cout, M), jnp.float32),
        compiler_params=pltpu.CompilerParams(dimension_semantics=("arbitrary",)),
    )(*args)

    return out2d.reshape(Cout, N, H, W).transpose(1, 0, 2, 3)     # -> NCHW


# ----------------------------- pure-JAX reference -----------------------------
def ref_forward(x_nchw, params, *, use_bn=True):
    x = jnp.transpose(x_nchw, (0, 2, 3, 1)).astype(jnp.float32)

    def conv3x3(z, w):
        return lax.conv_general_dilated(
            z, w, (1, 1), "SAME", dimension_numbers=("NHWC", "HWIO", "NHWC"))

    def bn(z, g, b):
        mean = z.mean(axis=(0, 1, 2), keepdims=True)
        var = ((z - mean) ** 2).mean(axis=(0, 1, 2), keepdims=True)
        return ((z - mean) * lax.rsqrt(var + EPS) * g.reshape(1, 1, 1, -1)
                + b.reshape(1, 1, 1, -1))

    out = conv3x3(x, params["w1"])
    if use_bn:
        out = bn(out, params["g1"], params["b1"])
    out = jax.nn.relu(out)
    out = conv3x3(out, params["w2"])
    if use_bn:
        out = bn(out, params["g2"], params["b2"])
    cin, cout = x.shape[-1], params["w2"].shape[-1]
    if cin != cout:
        sc = jnp.einsum("nhwc,cd->nhwd", x, params["wsc"])
        sc = bn(sc, params["gsc"], params["bsc"])
    else:
        sc = x
    out = jax.nn.relu(out + sc)
    return jnp.transpose(out, (0, 3, 1, 2))


if __name__ == "__main__":
    key = jax.random.PRNGKey(0)
    N, Cin, H, W = 2, 4, 16, 16
    planes = 8   # in_planes != planes -> projection shortcut (1x1 conv + BN)
    ks = jax.random.split(key, 10)
    x = jax.random.normal(ks[0], (N, Cin, H, W), jnp.float32)     # NCHW like PyTorch

    params = {
        "w1": jax.random.normal(ks[1], (3, 3, Cin, planes), jnp.float32) * 0.2,
        "g1": jax.random.uniform(ks[2], (1, planes), jnp.float32, 0.5, 1.5),
        "b1": jax.random.normal(ks[3], (1, planes), jnp.float32) * 0.1,
        "w2": jax.random.normal(ks[4], (3, 3, planes, planes), jnp.float32) * 0.2,
        "g2": jax.random.uniform(ks[5], (1, planes), jnp.float32, 0.5, 1.5),
        "b2": jax.random.normal(ks[6], (1, planes), jnp.float32) * 0.1,
        "wsc": jax.random.normal(ks[7], (Cin, planes), jnp.float32) * 0.2,
        "gsc": jax.random.uniform(ks[8], (1, planes), jnp.float32, 0.5, 1.5),
        "bsc": jax.random.normal(ks[9], (1, planes), jnp.float32) * 0.1,
    }

    out = jax.block_until_ready(basic_block_forward(x, params, stride=1, use_bn=True))
    ref = jax.block_until_ready(ref_forward(x, params, use_bn=True))

    assert out.shape == (N, planes, H, W), out.shape
    err = jnp.abs(out - ref)
    max_err = float(jnp.max(err))
    mean_err = float(jnp.mean(err))
    # bf16 MXU operands (f32 accumulation) => tolerance is loosened vs. the f32
    # reference, as anticipated in the perf review; structural bugs would show
    # up as O(1) errors and still fail this check.
    assert max_err < 2e-1 and mean_err < 3e-2, (max_err, mean_err)
    print("KERNEL_OK")
</pallas_src>

<mosaic_0001>
module attributes {stable_mosaic.version = 11 : i64} {
  func.func @probe(%arg0: memref<1x128xf32, #tpu.memory_space<vmem>>, %arg1: memref<1x128xf32, #tpu.memory_space<vmem>>) attributes {dimension_semantics = [], scalar_prefetch = 0 : i64, scratch_operands = 0 : i64, tpu.core_type = #tpu.core_type<tc>} {
    %c0 = arith.constant 0 : index
    %c0_0 = arith.constant 0 : index
    %0 = vector.load %arg0[%c0, %c0_0] : memref<1x128xf32, #tpu.memory_space<vmem>>, vector<1x128xf32>
    %c1_i32 = arith.constant 1 : i32
    %1 = tpu.dynamic_rotate %0 by %c1_i32 dim 1 : vector<1x128xf32>, i32 -> vector<1x128xf32>
    %c0_1 = arith.constant 0 : index
    %c0_2 = arith.constant 0 : index
    %2 = vector.load %arg1[%c0_1, %c0_2] : memref<1x128xf32, #tpu.memory_space<vmem>>, vector<1x128xf32>
    tpu.vector_store %arg1[%c0_1, %c0_2], %1 {strides = array<i32>} : memref<1x128xf32, #tpu.memory_space<vmem>>, vector<1x128xf32>,
    return
  }
}

</mosaic_0001>

<bundles_post_ra>
// kernel: tpu_custom_call.1
= control target key start
LH: loop header
LB: loop body
LE: loop exit
PB: predicated region body
PF: predicated region fallthrough
CT: control target
= control target key end

     0   :  { %6 = vsyncpa [#allocation3], 0  ;;  %s128_s0 = inlined_call_operand.hbm [shape: f32[1,128], index: 0, kind: input, shape index: {}]   ;;  %s129_s1 = inlined_call_operand.hbm [shape: f32[1,128], index: 1, kind: output, shape index: {}]  }
   0x1   :  { %7 = vsyncpa [#allocation4], 0  ;;  %s91_s6 = smov [#allocation2]   ;;  %s43_s10 = scalar_lea.hbm %s128_s0, 16 }
   0x2   :  { %s14_s7 = sshll.u32 %s91_s6, 4  ;;  %p44_p0 = scmp.ne.s32.totalorder %s128_s0, %s43_s10  ;;  %s15_s7 = int_to_ptr.vmem [resolvable:$true] %s14_s7 }
   0x3   :  { %p47_p1 = scmp.lt.u32.totalorder %s43_s10, %s128_s0 }
   0x5   :  { %p49_p2 = pnand %p47_p1, %p44_p0 }
   0x7   :  { %52 = shalt.err (!%p49_p2)
}
   0x8   :  { %s53_s15 = scalar_lea.vmem %s15_s7, 16  ;;  %s57_s16 = scalar_lea.vmem %s15_s7, 32 }
   0x9   :  { %p54_p3 = scmp.ne.s32.totalorder %s15_s7, %s53_s15  ;;  %p58_p4 = scmp.lt.s32.totalorder %s15_s7, %s15_s7 }
   0xa   :  { %p59_p5 = scmp.lt.s32.totalorder %s57_s16, %s53_s15 }
   0xc   :  { %p60_p6 = por %p59_p5, %p58_p4 }
   0xe   :  { %p61_p7 = pnand %p60_p6, %p54_p3 }
  0x10   :  { %64 = shalt.err (!%p61_p7)
}
  0x11   :  { %17 = dma.hbm_to_vmem [thread:$0]  %s128_s0, 16, %s15_s7, [#allocation3]  }
  0x12   :  { %87 = dma.done.wait [#allocation3], 16  }
  0x13   :  { %88 = vsyncadd [#allocation3], 4294967280  ;;  %v21_v0 = vld [vmem:[#allocation2] sm:$0x1]  ;;  %s92_s19 = smov 1   ;;  %s93_s20 = smov [#allocation5]  }
  0x14   :  { %22 = vrot.lane.b32.xlu0 %v21_v0, %s92_s19  ;;  %s31_s21 = sshll.u32 %s93_s20, 4  ;;  %s32_s21 = int_to_ptr.vmem [resolvable:$true] %s31_s21 }
  0x15   :  { %s65_s22 = scalar_lea.vmem %s32_s21, 16  ;;  %s69_s23 = scalar_lea.vmem %s32_s21, 32 }
  0x16   :  { %p66_p8 = scmp.ne.s32.totalorder %s32_s21, %s65_s22  ;;  %p70_p9 = scmp.lt.s32.totalorder %s32_s21, %s32_s21 }
  0x17   :  { %p71_p10 = scmp.lt.s32.totalorder %s69_s23, %s65_s22 }
  0x19   :  { %p72_p11 = por %p71_p10, %p70_p9 }
  0x1b   :  { %p73_p12 = pnand %p72_p11, %p66_p8 }
  0x86   :  { %v23_v1 = vpop.permute.xlu0 %22 }
  0x87   :  { %24 = vst [vmem:[#allocation5] sm:$0x1] %v23_v1 }
  0x88   :  { %76 = shalt.err (!%p73_p12)
}
  0x89   :  { %s77_s25 = scalar_lea.hbm %s129_s1, 16 }
  0x8a   :  { %p78_p13 = scmp.ne.s32.totalorder %s129_s1, %s77_s25  ;;  %p81_p0 = scmp.lt.u32.totalorder %s77_s25, %s129_s1 }
  0x8c   :  { %p83_p1 = pnand %p81_p0, %p78_p13 }
  0x8e   :  { %86 = shalt.err (!%p83_p1)
}
  0x8f   :  { %34 = dma.vmem_to_hbm [thread:$0]  %s32_s21, 16, %s129_s1, [#allocation4]  }
  0x90   :  { %89 = dma.done.wait [#allocation4], 16  }
  0x91   :  { %90 = vsyncadd [#allocation4], 4294967280 }
  0x92   :  { %38 = vsyncpa [#allocation3], 1 }
  0x93   :  { %39 = vsyncpa [#allocation4], 1 }

</bundles_post_ra>
